<compile_context>
chip_gen: v7x
topology: tpu7x:2x2x1
jax: 0.10.0
libtpu: 0.0.40
codegen_flags: <defaults>
</compile_context>

<pallas_src>
from functools import partial

import jax
import jax.numpy as jnp
from jax import lax
from jax.experimental import pallas as pl
from jax.experimental.pallas import tpu as pltpu

_NEG_BIG = -1.0e8                          # torch: sim*(1-eye) - eye*1e8
_TRANS_B = (((1,), (1,)), ((), ()))        # contraction dims for A @ B.T


def _pick_row_tile(n, cap=256):
    """Largest multiple-of-8 divisor of n that is <= cap (fallback: n)."""
    best = None
    t = 8
    while t <= min(n, cap):
        if n % t == 0:
            best = t
        t += 8
    return best if best is not None else n


# --------------------------------------------------------------------------
# Pass 1: row-tiled L2 normalization (torch F.normalize(p=2, eps=1e-12)).
# --------------------------------------------------------------------------
def _l2norm_kernel(z_ref, out_ref):
    z = z_ref[...]
    ssq = jnp.sum(z * z, axis=-1, keepdims=True)
    out_ref[...] = z * lax.rsqrt(jnp.maximum(ssq, 1e-24))


def _l2_normalize(z, block_rows=None):
    m, d = z.shape
    tr = block_rows if block_rows is not None else _pick_row_tile(m, cap=512)
    assert m % tr == 0
    return pl.pallas_call(
        _l2norm_kernel,
        grid=(m // tr,),
        in_specs=[pl.BlockSpec((tr, d), lambda i: (i, 0))],
        out_specs=pl.BlockSpec((tr, d), lambda i: (i, 0)),
        out_shape=jax.ShapeDtypeStruct((m, d), jnp.float32),
        compiler_params=pltpu.CompilerParams(
            dimension_semantics=("parallel",)),
    )(z)


# --------------------------------------------------------------------------
# Pass 2: row-tiled similarity + log-softmax + positive-mask partial sums.
# --------------------------------------------------------------------------
def _supcon_kernel(zn_ref, lab_ref, labrow_ref, num_ref, cnt_ref, *rest,
                   temperature, n, tq, with_logits):
    logits_ref = rest[0] if with_logits else None
    i = pl.program_id(0)
    two_n = 2 * n
    inv_temp = 1.0 / temperature
    r0 = i * tq

    zn = zn_ref[...]                                            # (2N, D) resident
    lab_row = labrow_ref[...]                                   # (1, 2N)
    # Labels are duplicated across the two halves, so the same (TQ, 1) label
    # tile serves both the z_i-half rows and the mirrored z_j-half rows.
    lab_tile = lab_ref[pl.ds(pl.multiple_of(r0, tq), tq), :]    # (TQ, 1)
    same = (lab_tile == lab_row).astype(jnp.float32)            # (TQ, 2N)
    col = lax.broadcasted_iota(jnp.int32, (tq, two_n), 1)
    loc = lax.broadcasted_iota(jnp.int32, (tq, two_n), 0)

    def slab(row0):
        # (TQ, 2N) similarity slab for global rows [row0, row0+TQ).
        rows = zn_ref[pl.ds(pl.multiple_of(row0, tq), tq), :] * inv_temp
        sim = lax.dot_general(rows, zn, _TRANS_B,
                              preferred_element_type=jnp.float32)
        diag = (row0 + loc) == col
        sim_m = jnp.where(diag, _NEG_BIG, sim)
        mask = jnp.where(diag, 0.0, same)
        m = jnp.max(sim_m, axis=1, keepdims=True)
        shifted = sim_m - m
        lse = jnp.log(jnp.sum(jnp.exp(shifted), axis=1, keepdims=True))
        log_sim = shifted - lse
        return (sim_m,
                jnp.sum(log_sim * mask, axis=0, keepdims=True),   # (1, 2N)
                jnp.sum(mask, axis=0, keepdims=True))             # (1, 2N)

    sim_a, num_a, cnt_a = slab(r0)            # rows from the z_i half
    _, num_b, cnt_b = slab(n + r0)            # mirrored rows from the z_j half

    num_ref[...] = (num_a + num_b).reshape(1, 1, two_n)
    cnt_ref[...] = (cnt_a + cnt_b).reshape(1, 1, two_n)

    if with_logits:
        # sim_zij = sim_mat[:N, N:] — the diagonal mask never touches these
        # columns for rows < N, so this is the raw scaled similarity.
        logits_ref[...] = sim_a[:, n:]


def supcon_loss(z_i, z_j, labels, temperature=0.1, return_logits=False,
                block_rows=None, num_classes=None):
    """SupConLoss forward. `num_classes` is unused: the positive mask is a
    direct label-equality compare (equivalent to one_hot @ one_hot.T)."""
    del num_classes
    n, d = z_i.shape
    two_n = 2 * n
    tq = block_rows if block_rows is not None else _pick_row_tile(n)
    assert n % tq == 0, "row tile must divide N"
    n_tiles = n // tq

    z = jnp.concatenate(
        [z_i.astype(jnp.float32), z_j.astype(jnp.float32)], axis=0)
    z_norm = _l2_normalize(z)

    labs = jnp.asarray(labels).astype(jnp.int32)
    lab_col = labs.reshape(n, 1)
    lab_row = jnp.concatenate([labs, labs], axis=0).reshape(1, two_n)

    kernel = partial(_supcon_kernel, temperature=float(temperature), n=n,
                     tq=tq, with_logits=return_logits)

    in_specs = [
        pl.BlockSpec((two_n, d), lambda i: (0, 0)),   # normalized z, resident
        pl.BlockSpec((n, 1), lambda i: (0, 0)),       # labels (column layout)
        pl.BlockSpec((1, two_n), lambda i: (0, 0)),   # labels (row layout)
    ]
    part_spec = pl.BlockSpec((1, 1, two_n), lambda i: (i, 0, 0))
    part_shape = jax.ShapeDtypeStruct((n_tiles, 1, two_n), jnp.float32)
    out_specs = [part_spec, part_spec]
    out_shapes = [part_shape, part_shape]
    if return_logits:
        out_specs.append(pl.BlockSpec((tq, n), lambda i: (i, 0)))
        out_shapes.append(jax.ShapeDtypeStruct((n, n), jnp.float32))

    res = pl.pallas_call(
        kernel,
        grid=(n_tiles,),
        in_specs=in_specs,
        out_specs=tuple(out_specs),
        out_shape=tuple(out_shapes),
        compiler_params=pltpu.CompilerParams(
            # Every grid step writes its own output blocks → fully parallel
            # (megacore-shardable on v7x; neutral on single-TC v5e/v6e).
            dimension_semantics=("parallel",),
            vmem_limit_bytes=48 * 1024 * 1024,
        ),
    )(z_norm, lab_col, lab_row)

    num, cnt = res[0], res[1]
    # Finalize (tiny): per-column cardinality division + scalar reduction.
    # mask is symmetric, so the column sum of mask equals torch's mask.sum(dim=1).
    col_num = jnp.sum(num, axis=(0, 1))                 # (2N,)
    col_cnt = jnp.sum(cnt, axis=(0, 1))                 # (2N,) = card_P_i
    loss = -jnp.sum(col_num / col_cnt) * (0.5 / n)

    if return_logits:
        sim_zij = res[2]
        correct_pairs = jnp.arange(n, dtype=jnp.int32)
        return loss, sim_zij, correct_pairs
    return loss


def _reference(z_i, z_j, labels, num_classes, temperature):
    """Plain-JAX replica of the PyTorch forward, for verification only."""
    n = z_i.shape[0]
    eye = jnp.eye(2 * n, dtype=jnp.float32)
    zi = z_i / jnp.maximum(jnp.linalg.norm(z_i, axis=-1, keepdims=True), 1e-12)
    zj = z_j / jnp.maximum(jnp.linalg.norm(z_j, axis=-1, keepdims=True), 1e-12)
    z = jnp.concatenate([zi, zj], axis=0)
    sim_mat = z @ z.T / temperature
    sim_mat = sim_mat * (1 - eye) - eye * 1e8
    labs = jax.nn.one_hot(labels, num_classes, dtype=jnp.float32)
    L = jnp.concatenate([labs, labs], axis=0)
    mask = (L @ L.T) * (1 - eye)
    card = mask.sum(axis=1)
    log_sim = jax.nn.log_softmax(sim_mat, axis=1)
    loss = -(log_sim * mask / card).sum() / (2 * n)
    return loss, sim_mat[:n, n:]


if __name__ == "__main__":
    N, D, NUM_CLASSES = 8, 32, 4
    TEMPERATURE = 0.1

    key = jax.random.PRNGKey(0)
    k1, k2, k3 = jax.random.split(key, 3)
    z_i = jax.random.normal(k1, (N, D), dtype=jnp.float32)
    z_j = jax.random.normal(k2, (N, D), dtype=jnp.float32)
    labels = jax.random.randint(k3, (N,), 0, NUM_CLASSES, dtype=jnp.int32)

    loss, sim_zij, correct_pairs = supcon_loss(
        z_i, z_j, labels, temperature=TEMPERATURE, return_logits=True)
    loss_only = supcon_loss(z_i, z_j, labels, temperature=TEMPERATURE,
                            return_logits=False)
    jax.block_until_ready((loss, sim_zij, correct_pairs, loss_only))

    ref_loss, ref_sim = _reference(z_i, z_j, labels, NUM_CLASSES, TEMPERATURE)
    assert jnp.allclose(loss, ref_loss, rtol=1e-4, atol=1e-4), (loss, ref_loss)
    assert jnp.allclose(loss_only, ref_loss, rtol=1e-4, atol=1e-4), (
        loss_only, ref_loss)
    assert jnp.allclose(sim_zij, ref_sim, rtol=1e-3, atol=1e-3)
    assert jnp.array_equal(correct_pairs, jnp.arange(N, dtype=jnp.int32))

    print("KERNEL_OK")
</pallas_src>

<mosaic_0001>
module attributes {stable_mosaic.version = 11 : i64} {
  func.func @_l2norm_kernel(%arg0: i32, %arg1: memref<16x32xf32, #tpu.memory_space<vmem>>, %arg2: memref<16x32xf32, #tpu.memory_space<vmem>>) attributes {dimension_semantics = [#tpu.dimension_semantics<parallel>], iteration_bounds = array<i64: 1>, scalar_prefetch = 0 : i64, scratch_operands = 0 : i64, tpu.core_type = #tpu.core_type<tc>, window_params = [{transform_indices = @transform_0, window_bounds = array<i64: 16, 32>}, {transform_indices = @transform_1, window_bounds = array<i64: 16, 32>}]} {
    %c0 = arith.constant 0 : index
    %c0_0 = arith.constant 0 : index
    %0 = vector.load %arg1[%c0, %c0_0] : memref<16x32xf32, #tpu.memory_space<vmem>>, vector<16x32xf32>
    %1 = arith.mulf %0, %0 : vector<16x32xf32>
    %cst = arith.constant dense<0.000000e+00> : vector<16xf32>
    %2 = vector.multi_reduction <add>, %1, %cst [1] : vector<16x32xf32> to vector<16xf32>
    %3 = vector.shape_cast %2 : vector<16xf32> to vector<16x1xf32>
    %cst_1 = arith.constant 1.000000e-24 : f32
    %4 = vector.broadcast %cst_1 : f32 to vector<16x1xf32>
    %5 = arith.maximumf %3, %4 : vector<16x1xf32>
    %6 = math.rsqrt %5 : vector<16x1xf32>
    %7 = vector.broadcast %6 : vector<16x1xf32> to vector<16x32xf32>
    %8 = arith.mulf %0, %7 : vector<16x32xf32>
    %c0_2 = arith.constant 0 : index
    %c0_3 = arith.constant 0 : index
    %9 = vector.load %arg2[%c0_2, %c0_3] : memref<16x32xf32, #tpu.memory_space<vmem>>, vector<16x32xf32>
    tpu.vector_store %arg2[%c0_2, %c0_3], %8 {strides = array<i32>} : memref<16x32xf32, #tpu.memory_space<vmem>>, vector<16x32xf32>,
    return
  }
  func.func @transform_0(%arg0: i32) -> (i32, i32) {
    %c0_i32 = arith.constant 0 : i32
    %c0_i32_0 = arith.constant 0 : i32
    return %arg0, %c0_i32 : i32, i32
  }
  func.func @transform_1(%arg0: i32) -> (i32, i32) {
    %c0_i32 = arith.constant 0 : i32
    %c0_i32_0 = arith.constant 0 : i32
    return %arg0, %c0_i32 : i32, i32
  }
}

</mosaic_0001>

<bundles_post_ra>
// kernel: tpu_custom_call.1
= control target key start
LH: loop header
LB: loop body
LE: loop exit
PB: predicated region body
PF: predicated region fallthrough
CT: control target
= control target key end

     0   :  { %6 = vsyncpa [#allocation3], 0  ;;  %s163_s0 = inlined_call_operand.hbm [shape: f32[16,32], index: 0, kind: input, shape index: {}]   ;;  %s164_s1 = inlined_call_operand.hbm [shape: f32[16,32], index: 1, kind: output, shape index: {}]  }
   0x1   :  { %7 = vsyncpa [#allocation4], 0  ;;  %s115_s6 = smov [#allocation2]   ;;  %s67_s10 = scalar_lea.hbm %s163_s0, 256 }
   0x2   :  { %s13_s7 = sshll.u32 %s115_s6, 4  ;;  %p68_p0 = scmp.ne.s32.totalorder %s163_s0, %s67_s10  ;;  %s14_s7 = int_to_ptr.vmem [resolvable:$true] %s13_s7 }
   0x3   :  { %p71_p1 = scmp.lt.u32.totalorder %s67_s10, %s163_s0 }
   0x5   :  { %p73_p2 = pnand %p71_p1, %p68_p0 }
   0x7   :  { %76 = shalt.err (!%p73_p2)
}
   0x8   :  { %s77_s15 = scalar_lea.vmem %s14_s7, 256  ;;  %p82_p4 = scmp.lt.s32.totalorder %s14_s7, %s14_s7 }
   0x9   :  { %p78_p3 = scmp.ne.s32.totalorder %s14_s7, %s77_s15  ;;  %p83_p5 = scmp.lt.s32.totalorder %s77_s15, %s77_s15 }
   0xb   :  { %p84_p6 = por %p83_p5, %p82_p4 }
   0xd   :  { %p85_p7 = pnand %p84_p6, %p78_p3 }
   0xf   :  { %88 = shalt.err (!%p85_p7)
}
  0x10   :  { %s116_s16 = smov 128   ;;  %s117_s17 = smov 8  }
  0x11   :  { %19 = dma.hbm_to_vmem [thread:$0]  %s163_s0, 256, %s14_s7, [#allocation3], %s116_s16, %s116_s16, %s117_s17  }
  0x12   :  { %111 = dma.done.wait [#allocation3], 256  }
  0x13   :  { %112 = vsyncadd [#allocation3], 4294967040  ;;  %v23_v0 = vld [vmem:[#allocation2] sm:$0xff]  ;;  %vm27_vm0 = vcmask 261120   ;;  %v24_v1 = vld [vmem:[#allocation2 + $0x8] sm:$0xff]  ;;  %s118_s0 = smov [#allocation5]  }
  0x14   :  { %v25_v2 = vmul.f32 %v23_v0, %v23_v0  ;;  %v26_v3 = vmul.f32 %v24_v1, %v24_v1  ;;  %s47_s20 = sshll.u32 %s118_s0, 4  ;;  %s48_s20 = int_to_ptr.vmem [resolvable:$true] %s47_s20 }
  0x15   :  { %s89_s21 = scalar_lea.vmem %s48_s20, 256  ;;  %p94_p9 = scmp.lt.s32.totalorder %s48_s20, %s48_s20 }
  0x16   :  { %v28_v4 = vsel %vm27_vm0, %v25_v2, 0.0  ;;  %v31_v5 = vsel %vm27_vm0, %v26_v3, 0.0  ;;  %p90_p8 = scmp.ne.s32.totalorder %s48_s20, %s89_s21  ;;  %p95_p10 = scmp.lt.s32.totalorder %s89_s21, %s89_s21 }
  0x17   :  { %29 = vadd.xlane.f32.xlu0 %v28_v4 }
  0x18   :  { %p96_p11 = por %p95_p10, %p94_p9 }
  0x1a   :  { %p97_p12 = pnand %p96_p11, %p90_p8 }
  0x1b   :  { %32 = vadd.xlane.f32.xlu0 %v31_v5 }
  0xa4   :  { %v30_v6 = vpop.xlane.xlu0 %29 }
  0xa5   :  { %v34_v7 = vmax.f32 %v30_v6, 1e-24 }
  0xa7   :  { %63 = vrsqrt.f32 %v34_v7 }
  0xa8   :  { %v33_v8 = vpop.xlane.xlu0 %32 }
  0xa9   :  { %v35_v9 = vmax.f32 %v33_v8, 1e-24 }
  0xab   :  { %65 = vrsqrt.f32 %v35_v9 }
  0xb1   :  { %v64_v10 = vpop.eup %63 }
  0xb2   :  { %v38_v11 = vmul.f32 %v64_v10, %v23_v0 }
  0xb4   :  { %40 = vst.msk [vmem:[#allocation5] sm:$0xff] %vm27_vm0, %v38_v11 }
  0xb5   :  { %v66_v12 = vpop.eup %65 }
  0xb6   :  { %v39_v13 = vmul.f32 %v66_v12, %v24_v1 }
  0xb8   :  { %41 = vst.msk [vmem:[#allocation5 + $0x8] sm:$0xff] %vm27_vm0, %v39_v13 }
  0xb9   :  { %100 = shalt.err (!%p97_p12)
}
  0xba   :  { %s101_s24 = scalar_lea.hbm %s164_s1, 256 }
  0xbb   :  { %p102_p13 = scmp.ne.s32.totalorder %s164_s1, %s101_s24  ;;  %p105_p0 = scmp.lt.u32.totalorder %s101_s24, %s164_s1 }
  0xbd   :  { %p107_p1 = pnand %p105_p0, %p102_p13 }
  0xbf   :  { %110 = shalt.err (!%p107_p1)
}
  0xc0   :  { %53 = dma.vmem_to_hbm [thread:$0]  %s48_s20, 256, %s164_s1, [#allocation4], %s116_s16, %s116_s16, %s117_s17  }
  0xc1   :  { %113 = dma.done.wait [#allocation4], 256  }
  0xc2   :  { %114 = vsyncadd [#allocation4], 4294967040 }
  0xc3   :  { %57 = vsyncpa [#allocation3], 1 }
  0xc4   :  { %58 = vsyncpa [#allocation4], 1 }

</bundles_post_ra>
